<compile_context>
chip_gen: v7x
topology: tpu7x:2x2x1
jax: 0.10.0
libtpu: 0.0.40
codegen_flags: <defaults>
</compile_context>

<pallas_src>
import jax
import jax.numpy as jnp
from jax.experimental import pallas as pl
from jax.experimental.pallas import tpu as pltpu


def model_kernel(r01_ref, u2_ref, w_ref, b_ref, out_ref):
    # r01_ref: (2, F) uniforms -> row 0 = t1, row 1 = u1 (dropout p=0.5 mask)
    # u2_ref : (F, O) uniforms -> dropout p=0.7 mask for x1
    # w_ref  : (F, O) linear weight (already transposed to (in, out))
    # b_ref  : (1, O) linear bias
    t1 = r01_ref[0:1, :]                      # (1, F)
    u1 = r01_ref[1:2, :]                      # (1, F)

    two_t1 = t1 + t1                          # hoisted, reused for t3 and dropout(t1)

    # t4 = dropout(t1, p=0.5): keep w.p. 0.5, scale by 1/0.5 -> kept value = 2*t1
    t4 = jnp.where(u1 >= jnp.float32(0.5), two_t1, jnp.float32(0.0))   # (1, F)

    # Single small MXU op: M = [ones ; t4] @ W  -> (2, O)
    #   M[0] = column sums of W, M[1] = t4 @ W
    lhs = jnp.concatenate([jnp.ones_like(t4), t4], axis=0)             # (2, F)
    M = jnp.dot(lhs, w_ref[...], preferred_element_type=jnp.float32)   # (2, O)

    # Rank-1 outer product (no transpose): outer[i, o] = 2*t1[i] * colsum_W[o]
    outer = jax.lax.dot_general(
        two_t1, M[0:1, :], (((0,), (0,)), ((), ())),
        preferred_element_type=jnp.float32,
    )                                                                  # (F, O)

    # x1[i, o] = 2*t1[i]*colsum_W[o] + (t4@W)[o] + b[o]
    x1 = outer + (M[1:2, :] + b_ref[...])                              # (F, O)

    # x3 = dropout(x1, p=0.7): keep w.p. 0.3, scale by 1/0.3
    x3 = jnp.where(u2_ref[...] >= jnp.float32(0.7),
                   x1 * jnp.float32(1.0 / 0.3),
                   jnp.float32(0.0))
    out_ref[...] = x3


@jax.jit
def model_forward(x, w, b, key):
    B, F = x.shape
    assert B == 1, "kernel assumes batch size 1 (matches the spec input (1, 10))"
    O = w.shape[1]

    # torch.rand_like / dropout RNG cannot match PyTorch bit-for-bit; draw the
    # uniforms with jax.random and hand them to the kernel as two tiny VMEM inputs.
    k1, k2 = jax.random.split(key)
    r01 = jax.random.uniform(k1, (2, F), dtype=jnp.float32)   # t1 and u1
    u2 = jax.random.uniform(k2, (F, O), dtype=jnp.float32)    # mask for dropout(x1, 0.7)

    out2d = pl.pallas_call(
        model_kernel,
        out_shape=jax.ShapeDtypeStruct((F, O), jnp.float32),
        in_specs=[
            pl.BlockSpec(memory_space=pltpu.MemorySpace.VMEM),  # r01 (2, F)
            pl.BlockSpec(memory_space=pltpu.MemorySpace.VMEM),  # u2  (F, O)
            pl.BlockSpec(memory_space=pltpu.MemorySpace.VMEM),  # W   (F, O)
            pl.BlockSpec(memory_space=pltpu.MemorySpace.VMEM),  # b   (1, O)
        ],
        out_specs=pl.BlockSpec(memory_space=pltpu.MemorySpace.VMEM),
    )(r01, u2, w, b)

    # torch returns x3.flatten() -> (B * F * 1 * O,) == (30,)
    return out2d.reshape(-1)


if __name__ == "__main__":
    key = jax.random.PRNGKey(0)
    kx, kw, kb, kr = jax.random.split(key, 4)

    IN_FEATURES, OUT_FEATURES = 10, 3
    x = jax.random.uniform(kx, (1, IN_FEATURES), dtype=jnp.float32)

    # Deterministic nn.Linear-style init: U(-1/sqrt(in), 1/sqrt(in)).
    bound = 1.0 / float(IN_FEATURES) ** 0.5
    w = jax.random.uniform(kw, (IN_FEATURES, OUT_FEATURES), jnp.float32,
                           minval=-bound, maxval=bound)
    b = jax.random.uniform(kb, (1, OUT_FEATURES), jnp.float32,
                           minval=-bound, maxval=bound)

    out = model_forward(x, w, b, kr)
    out = jax.block_until_ready(out)

    assert out.shape == (IN_FEATURES * OUT_FEATURES,), out.shape
    assert out.dtype == jnp.float32
    assert bool(jnp.all(jnp.isfinite(out)))
    print("KERNEL_OK")
</pallas_src>

<mosaic_0001>
module attributes {stable_mosaic.version = 11 : i64} {
  func.func @model_kernel(%arg0: memref<2x10xf32, #tpu.memory_space<vmem>>, %arg1: memref<10x3xf32, #tpu.memory_space<vmem>>, %arg2: memref<10x3xf32, #tpu.memory_space<vmem>>, %arg3: memref<1x3xf32, #tpu.memory_space<vmem>>, %arg4: memref<10x3xf32, #tpu.memory_space<vmem>>) attributes {dimension_semantics = [], scalar_prefetch = 0 : i64, scratch_operands = 0 : i64, tpu.core_type = #tpu.core_type<tc>} {
    %c0 = arith.constant 0 : index
    %c0_0 = arith.constant 0 : index
    %0 = vector.load %arg0[%c0, %c0_0] : memref<2x10xf32, #tpu.memory_space<vmem>>, vector<1x10xf32>
    %c1 = arith.constant 1 : index
    %c0_1 = arith.constant 0 : index
    %1 = vector.load %arg0[%c1, %c0_1] : memref<2x10xf32, #tpu.memory_space<vmem>>, vector<1x10xf32>
    %2 = arith.addf %0, %0 : vector<1x10xf32>
    %cst = arith.constant 5.000000e-01 : f32
    %3 = vector.broadcast %cst : f32 to vector<1x10xf32>
    %4 = arith.cmpf oge, %1, %3 : vector<1x10xf32>
    %cst_2 = arith.constant 0.000000e+00 : f32
    %5 = vector.broadcast %cst_2 : f32 to vector<1x10xf32>
    %6 = arith.select %4, %2, %5 : vector<1x10xi1>, vector<1x10xf32>
    %cst_3 = arith.constant 1.000000e+00 : f32
    %7 = vector.broadcast %cst_3 : f32 to vector<1x10xf32>
    %8 = tpu.concatenate %7, %6 in 0 : vector<1x10xf32>, vector<1x10xf32> -> vector<2x10xf32>
    %c0_4 = arith.constant 0 : index
    %c0_5 = arith.constant 0 : index
    %9 = vector.load %arg2[%c0_4, %c0_5] : memref<10x3xf32, #tpu.memory_space<vmem>>, vector<10x3xf32>
    %cst_6 = arith.constant dense<0.000000e+00> : vector<2x3xf32>
    %10 = tpu.matmul %8, %9, %cst_6 {dimension_numbers = #tpu.dot_dimension_numbers<[1], [0], [0], [1], [0, 0, 1, 1], [], []>} : vector<2x10xf32>, vector<10x3xf32>, vector<2x3xf32> -> vector<2x3xf32>
    %11 = vector.extract_strided_slice %10 {offsets = [0, 0], sizes = [1, 3], strides = [1, 1]} : vector<2x3xf32> to vector<1x3xf32>
    %cst_7 = arith.constant dense<0.000000e+00> : vector<10x3xf32>
    %12 = tpu.matmul %2, %11, %cst_7 {dimension_numbers = #tpu.dot_dimension_numbers<[0], [0], [1], [1], [0, 1, 1, 1], [], []>} : vector<1x10xf32>, vector<1x3xf32>, vector<10x3xf32> -> vector<10x3xf32>
    %13 = vector.extract_strided_slice %10 {offsets = [1, 0], sizes = [1, 3], strides = [1, 1]} : vector<2x3xf32> to vector<1x3xf32>
    %c0_8 = arith.constant 0 : index
    %c0_9 = arith.constant 0 : index
    %14 = vector.load %arg3[%c0_8, %c0_9] : memref<1x3xf32, #tpu.memory_space<vmem>>, vector<1x3xf32>
    %15 = arith.addf %13, %14 : vector<1x3xf32>
    %16 = vector.broadcast %15 : vector<1x3xf32> to vector<10x3xf32>
    %17 = arith.addf %12, %16 : vector<10x3xf32>
    %c0_10 = arith.constant 0 : index
    %c0_11 = arith.constant 0 : index
    %18 = vector.load %arg1[%c0_10, %c0_11] : memref<10x3xf32, #tpu.memory_space<vmem>>, vector<10x3xf32>
    %cst_12 = arith.constant 0.699999988 : f32
    %19 = vector.broadcast %cst_12 : f32 to vector<10x3xf32>
    %20 = arith.cmpf oge, %18, %19 : vector<10x3xf32>
    %cst_13 = arith.constant 3.33333325 : f32
    %21 = vector.broadcast %cst_13 : f32 to vector<10x3xf32>
    %22 = arith.mulf %17, %21 : vector<10x3xf32>
    %cst_14 = arith.constant 0.000000e+00 : f32
    %23 = vector.broadcast %cst_14 : f32 to vector<10x3xf32>
    %24 = arith.select %20, %22, %23 : vector<10x3xi1>, vector<10x3xf32>
    %c0_15 = arith.constant 0 : index
    %c0_16 = arith.constant 0 : index
    %25 = vector.load %arg4[%c0_15, %c0_16] : memref<10x3xf32, #tpu.memory_space<vmem>>, vector<10x3xf32>
    tpu.vector_store %arg4[%c0_15, %c0_16], %24 {strides = array<i32>} : memref<10x3xf32, #tpu.memory_space<vmem>>, vector<10x3xf32>,
    return
  }
}

</mosaic_0001>

<bundles_post_ra>
// kernel: model_forward.3
= control target key start
LH: loop header
LB: loop body
LE: loop exit
PB: predicated region body
PF: predicated region fallthrough
CT: control target
= control target key end

     0   :  { %vm33_vm0 = vcmask 1041408   ;;  %v284_v0 = vmov 0.0|0.0   ;;  %vm285_vm1 = vmmov 1   ;;  %vm286_vm3 = vmmov 0   ;;  %s340_s2 = inlined_call_operand.vmem [shape: f32[10,3], index: 2, kind: input, shape index: {}]   ;;  %s341_s0 = inlined_call_operand.vmem [shape: f32[2,10], index: 0, kind: input, shape index: {}]   ;;  %s342_s3 = inlined_call_operand.vmem [shape: f32[1,3], index: 3, kind: input, shape index: {}]   ;;  %s343_s1 = inlined_call_operand.vmem [shape: f32[10,3], index: 1, kind: input, shape index: {}]   ;;  %s344_s4 = inlined_call_operand.vmem [shape: f32[10,3], index: 4, kind: output, shape index: {}]  }
   0x1   :  { %276 = vmatprep.subr.bf16.mxu0 %v284_v0  ;;  %v27_v1 = vld [vmem:[%s340_s2] sm:$0xff]  ;;  %v28_v2 = vld [vmem:[%s340_s2 + $0x8] sm:$0x3]  ;;  %vm278_vm2 = vmpackc.low %vm33_vm0, %vm285_vm1  ;;  %v287_v4 = vmov 0.0   ;;  %vm25_vm5 = vcmask 1040384   ;;  %vm29_vm6 = vcmask 80896   ;;  %v115_v15 = vlaneseq }
   0x2   :  { %v277_v3 = vpack.c.bf16 %v28_v2, %v27_v1  ;;  %268 = vmatprep.mubr.msk.f32.mxu0 %vm286_vm3, %v287_v4  ;;  %v17_v5 = vld [vmem:[%s341_s0] sm:$0x1]  ;;  %v18_v6 = vld [vmem:[%s341_s0 + $0x1] sm:$0x1]  ;;  %vm151_vm7 = vcmask 7168   ;;  %vm246_vm9 = vcmask 17408  }
   0x3   :  { %v19_v7 = vadd.f32 %v17_v5, %v17_v5  ;;  %vm20_vm4 = vcmp.ge.f32.partialorder %v18_v6, 0.5  ;;  %v116_v16 = vshrl.u32 %v115_v15, 7  ;;  %v254_v17 = vld [vmem:[%s342_s3] ss:$0 sm:$0xff]  ;;  %v237_v21 = vld [vmem:[%s343_s1 + $0x8] sm:$0x3] }
   0x4   :  { %279 = vmatpush3.bf16.msk.msra.mxu0 %vm278_vm2, %v277_v3  ;;  %v236_v23 = vld [vmem:[%s343_s1] sm:$0xff]  ;;  %vm239_vm8 = vcmp.ge.f32.partialorder %v237_v21, 0.7  ;;  %vm244_vm11 = vcmask 23552  }
   0x5   :  { %v21_v8 = vsel %vm20_vm4, %v19_v7, 0.0  ;;  %119 = vxpose.xlu0.b32.start.end [1/1] (short) (narrow) %v19_v7, 16  ;;  %v117_v19 = vsub.s32 1, %v116_v16  ;;  %vm238_vm10 = vcmp.ge.f32.partialorder %v236_v23, 0.7 }
   0x6   :  { %v23_v9 = vrot.slane %v21_v8, 7 }
   0x8   :  { %v26_v10 = vsel %vm25_vm5, 1.0, %v23_v9 }
   0x9   :  { %269 = vmatmul.mubr.msk.f32.vlgmr.msra.gmra.mrb[0].mxu0 %vm29_vm6, %v26_v10 }
  0x85   :  { %v135_v11 = vpop.trf.xlu0 }
  0x86   :  { %273 = vmatprep.mubr.msk.f32.mxu1 %vm151_vm7, %v135_v11 }
  0x89   :  { %v136_v13 = vpop.trf.xlu0 }
  0xdc   :  { %v103_v12 = vpop.f32.mrb[0].mxu0 }
  0xdd   :  { %v270_v14 = vpop.f32.mrb[1].mxu0  ;;  %271 = vmatprep.subr.msk.mxu1 %vm25_vm5, %v103_v12  ;;  %v114_v18 = vadd.f32 %v254_v17, %v103_v12 }
  0xde   :  { %272 = vmatpush3.msk.msra.mxu1 %vm25_vm5, %v103_v12 }
  0xdf   :  { %274 = vmatmul.mubr.msk.f32.vlgmr.msra.gmra.mrb[0].mxu1 %vm151_vm7, %v136_v13  ;;  %v118_v20 = vrot.slane %v114_v18, %v117_v19 }
 0x1b2   :  { %v275_v22 = vpop.f32.mrb[0].mxu1 }
 0x1b3   :  { %v233_v24 = vadd.f32 %v275_v22, %v118_v20  ;;  %v227_v25 = vpop.f32.mrb[1].mxu1 }
 0x1b4   :  { %v228_v26 = vadd.f32 %v227_v25, %v118_v20 }
 0x1b5   :  { %v241_v27 = vmul.f32 3.3333333, %v233_v24 }
 0x1b6   :  { %v240_v28 = vmul.f32 3.3333333, %v228_v26 }
 0x1b7   :  { %v243_v29 = vsel %vm239_vm8, %v241_v27, 0.0 }
 0x1b8   :  { %247 = vst.msk [vmem:[%s344_s4 + $0x8] sm:$0x3] %vm246_vm9, %v243_v29  ;;  %v242_v30 = vsel %vm238_vm10, %v240_v28, 0.0 }
 0x1b9   :  { %245 = vst.msk [vmem:[%s344_s4] sm:$0xff] %vm244_vm11, %v242_v30 }

</bundles_post_ra>
